<compile_context>
chip_gen: v7x
topology: tpu7x:2x2x1
jax: 0.10.0
libtpu: 0.0.40
codegen_flags: <defaults>
</compile_context>

<pallas_src>
import functools

import jax
import jax.numpy as jnp
from jax.experimental import pallas as pl
from jax.experimental.pallas import tpu as pltpu

_LANE = 128      # vreg lane width
_SUBLANE = 8     # vreg sublane count (f32)


def _make_rezero_kernel(fn):
    """Kernel: o = fn(x) * g, with g a scalar broadcast from a (1,1) operand."""

    def kernel(x_ref, g_ref, o_ref):
        y = fn(x_ref[...])                      # fused elementwise fn (VPU/EUP)
        o_ref[...] = (y * g_ref[0, 0]).astype(o_ref.dtype)

    return kernel


def rezero_pallas(x, g, fn=None, block_rows=4096):
    """Rezero forward: fn(x) * g.

    x  : any-shaped float array (e.g. NCHW activations)
    g  : scalar parameter, shape (1,) or () (PyTorch init: zeros)
    fn : elementwise JAX callable fused into the kernel (None -> identity)
    """
    if fn is None:
        fn = lambda t: t

    orig_shape = x.shape
    dtype = x.dtype
    total = int(x.size)

    # Lane-dense 2-D view: (rows, 128). Pad rows up so blocks tile evenly and
    # the sublane constraint (multiple of 8, or full extent) is satisfied.
    rows_needed = max(pl.cdiv(total, _LANE), _SUBLANE)
    rows_rounded = pl.cdiv(rows_needed, _SUBLANE) * _SUBLANE
    blk = int(min(block_rows, rows_rounded))
    blk = max(blk, _SUBLANE)
    n_blocks = pl.cdiv(rows_rounded, blk)
    rows_padded = n_blocks * blk
    padded_total = rows_padded * _LANE

    flat = x.reshape(-1)
    if padded_total != total:
        flat = jnp.pad(flat, (0, padded_total - total))
    x2d = flat.reshape(rows_padded, _LANE)
    g2d = jnp.asarray(g, jnp.float32).reshape(1, 1)

    out2d = pl.pallas_call(
        _make_rezero_kernel(fn),
        out_shape=jax.ShapeDtypeStruct((rows_padded, _LANE), dtype),
        grid=(n_blocks,),
        in_specs=[
            pl.BlockSpec((blk, _LANE), lambda i: (i, 0)),   # activation tile
            pl.BlockSpec((1, 1), lambda i: (0, 0)),         # scalar g (broadcast)
        ],
        out_specs=pl.BlockSpec((blk, _LANE), lambda i: (i, 0)),
        compiler_params=pltpu.CompilerParams(
            dimension_semantics=("parallel",),
            vmem_limit_bytes=32 * 1024 * 1024,
        ),
    )(x2d, g2d)

    out = out2d.reshape(-1)
    if padded_total != total:
        out = out[:total]
    return out.reshape(orig_shape)


if __name__ == "__main__":
    key = jax.random.PRNGKey(0)
    kx, kg, kx2 = jax.random.split(key, 3)

    # Small shapes consistent with the diffusion model's activations.
    x = jax.random.normal(kx, (2, 4, 16, 16), dtype=jnp.float32)
    g = jax.random.normal(kg, (1,), dtype=jnp.float32)
    fn = jax.nn.gelu  # stand-in elementwise wrapped fn

    out = jax.block_until_ready(rezero_pallas(x, g, fn=fn))
    ref = fn(x) * g[0]
    assert out.shape == x.shape, out.shape
    assert jnp.allclose(out, ref, atol=1e-6, rtol=1e-6), float(
        jnp.max(jnp.abs(out - ref)))

    # Faithful PyTorch init (g = 0): output must be exactly zero.
    out0 = jax.block_until_ready(
        rezero_pallas(x, jnp.zeros((1,), jnp.float32), fn=fn))
    assert jnp.all(out0 == 0.0)

    # Ragged / non-128-multiple shape exercises the padding path.
    x2 = jax.random.normal(kx2, (2, 3, 7, 5), dtype=jnp.float32)
    out2 = jax.block_until_ready(rezero_pallas(x2, g, fn=fn))
    ref2 = fn(x2) * g[0]
    assert out2.shape == x2.shape
    assert jnp.allclose(out2, ref2, atol=1e-6, rtol=1e-6), float(
        jnp.max(jnp.abs(out2 - ref2)))

    print("KERNEL_OK")
</pallas_src>

<mosaic_0001>
module attributes {stable_mosaic.version = 11 : i64} {
  func.func @kernel(%arg0: i32, %arg1: memref<16x128xf32, #tpu.memory_space<vmem>>, %arg2: memref<1x1xf32, #tpu.memory_space<vmem>>, %arg3: memref<16x128xf32, #tpu.memory_space<vmem>>) attributes {dimension_semantics = [#tpu.dimension_semantics<parallel>], iteration_bounds = array<i64: 1>, scalar_prefetch = 0 : i64, scratch_operands = 0 : i64, tpu.core_type = #tpu.core_type<tc>, window_params = [{transform_indices = @transform_0, window_bounds = array<i64: 16, 128>}, {pipeline_mode = #tpu.pipeline_mode<synchronous>, transform_indices = @transform_1, window_bounds = array<i64: 1, 1>}, {transform_indices = @transform_2, window_bounds = array<i64: 16, 128>}]} {
    %c0 = arith.constant 0 : index
    %c0_0 = arith.constant 0 : index
    %0 = vector.load %arg1[%c0, %c0_0] : memref<16x128xf32, #tpu.memory_space<vmem>>, vector<16x128xf32>
    %1 = arith.mulf %0, %0 : vector<16x128xf32>
    %2 = arith.mulf %0, %1 : vector<16x128xf32>
    %cst = arith.constant 4.471500e-02 : f32
    %3 = vector.broadcast %cst : f32 to vector<16x128xf32>
    %4 = arith.mulf %3, %2 : vector<16x128xf32>
    %5 = arith.addf %0, %4 : vector<16x128xf32>
    %cst_1 = arith.constant 0.797884583 : f32
    %6 = vector.broadcast %cst_1 : f32 to vector<16x128xf32>
    %7 = arith.mulf %6, %5 : vector<16x128xf32>
    %8 = math.tanh %7 : vector<16x128xf32>
    %cst_2 = arith.constant 1.000000e+00 : f32
    %9 = vector.broadcast %cst_2 : f32 to vector<16x128xf32>
    %10 = arith.addf %9, %8 : vector<16x128xf32>
    %cst_3 = arith.constant 5.000000e-01 : f32
    %11 = vector.broadcast %cst_3 : f32 to vector<16x128xf32>
    %12 = arith.mulf %11, %10 : vector<16x128xf32>
    %13 = arith.mulf %0, %12 : vector<16x128xf32>
    %c0_4 = arith.constant 0 : index
    %c0_5 = arith.constant 0 : index
    %14 = vector.load %arg2[%c0_4, %c0_5] : memref<1x1xf32, #tpu.memory_space<vmem>>, vector<1x1xf32>
    %15 = vector.extract %14[0, 0] : f32 from vector<1x1xf32>
    %16 = vector.broadcast %15 : f32 to vector<16x128xf32>
    %17 = arith.mulf %13, %16 : vector<16x128xf32>
    %c0_6 = arith.constant 0 : index
    %c0_7 = arith.constant 0 : index
    %18 = vector.load %arg3[%c0_6, %c0_7] : memref<16x128xf32, #tpu.memory_space<vmem>>, vector<16x128xf32>
    tpu.vector_store %arg3[%c0_6, %c0_7], %17 {strides = array<i32>} : memref<16x128xf32, #tpu.memory_space<vmem>>, vector<16x128xf32>,
    return
  }
  func.func @transform_0(%arg0: i32) -> (i32, i32) {
    %c0_i32 = arith.constant 0 : i32
    %c0_i32_0 = arith.constant 0 : i32
    return %arg0, %c0_i32 : i32, i32
  }
  func.func @transform_1(%arg0: i32) -> (i32, i32) {
    %c0_i32 = arith.constant 0 : i32
    %c0_i32_0 = arith.constant 0 : i32
    %c0_i32_1 = arith.constant 0 : i32
    return %c0_i32, %c0_i32_0 : i32, i32
  }
  func.func @transform_2(%arg0: i32) -> (i32, i32) {
    %c0_i32 = arith.constant 0 : i32
    %c0_i32_0 = arith.constant 0 : i32
    return %arg0, %c0_i32 : i32, i32
  }
}

</mosaic_0001>

<bundles_post_ra>
// kernel: tpu_custom_call.1
= control target key start
LH: loop header
LB: loop body
LE: loop exit
PB: predicated region body
PF: predicated region fallthrough
CT: control target
= control target key end

     0   :  { %s182_s0 = inlined_call_operand.hbm [shape: f32[16,128], index: 0, kind: input, shape index: {}]   ;;  %s183_s1 = inlined_call_operand.<no memory space> [shape: f32[1,1], index: 1, kind: input, shape index: {}]   ;;  %s184_s2 = inlined_call_operand.hbm [shape: f32[16,128], index: 2, kind: output, shape index: {}]  }
   0x1   :  { %v7_v0 = vstv %s183_s1 }
   0x2   :  { %8 = vst [vmem:[#allocation2] sm:$0x1] %v7_v0 }
   0x3   :  { %9 = vsyncpa [#allocation4], 0 }
   0x4   :  { %10 = vsyncpa [#allocation5], 0  ;;  %s130_s11 = smov [#allocation3]   ;;  %s82_s15 = scalar_lea.hbm %s182_s0, 256 }
   0x5   :  { %s16_s12 = sshll.u32 %s130_s11, 4  ;;  %p83_p0 = scmp.ne.s32.totalorder %s182_s0, %s82_s15  ;;  %s17_s12 = int_to_ptr.vmem [resolvable:$true] %s16_s12 }
   0x6   :  { %p86_p1 = scmp.lt.u32.totalorder %s82_s15, %s182_s0 }
   0x8   :  { %p88_p2 = pnand %p86_p1, %p83_p0 }
   0xa   :  { %91 = shalt.err (!%p88_p2)
}
   0xb   :  { %s92_s1 = scalar_lea.vmem %s17_s12, 256  ;;  %p97_p4 = scmp.lt.s32.totalorder %s17_s12, %s17_s12 }
   0xc   :  { %p93_p3 = scmp.ne.s32.totalorder %s17_s12, %s92_s1  ;;  %p98_p5 = scmp.lt.s32.totalorder %s92_s1, %s92_s1 }
   0xe   :  { %p99_p6 = por %p98_p5, %p97_p4 }
  0x10   :  { %p100_p7 = pnand %p99_p6, %p93_p3 }
  0x12   :  { %103 = shalt.err (!%p100_p7)
}
  0x13   :  { %s131_s20 = smov 128   ;;  %s132_s21 = smov 8  }
  0x14   :  { %22 = dma.hbm_to_vmem [thread:$0]  %s182_s0, 256, %s17_s12, [#allocation4], %s131_s20, %s131_s20, %s132_s21  }
  0x15   :  { %126 = dma.done.wait [#allocation4], 256  }
  0x16   :  { %127 = vsyncadd [#allocation4], 4294967040  ;;  %v48_v1 = vld [vmem:[#allocation2] sm:$0x1]  ;;  %v28_v2 = vld [vmem:[#allocation3] sm:$0xff]  ;;  %s133_s0 = smov [#allocation6]  }
  0x17   :  { %72 = vpush %v48_v1  ;;  %v29_v3 = vld [vmem:[#allocation3 + $0x8] sm:$0xff]  ;;  %v30_v4 = vmul.f32 %v28_v2, %v28_v2  ;;  %s60_s24 = sshll.u32 %s133_s0, 4  ;;  %s61_s24 = int_to_ptr.vmem [resolvable:$true] %s60_s24 }
  0x18   :  { %v31_v5 = vmul.f32 %v29_v3, %v29_v3  ;;  %s104_s26 = scalar_lea.vmem %s61_s24, 256  ;;  %p109_p9 = scmp.lt.s32.totalorder %s61_s24, %s61_s24 }
  0x19   :  { %v32_v6 = vmul.f32 %v30_v4, %v28_v2  ;;  %p105_p8 = scmp.ne.s32.totalorder %s61_s24, %s104_s26  ;;  %p110_p10 = scmp.lt.s32.totalorder %s104_s26, %s104_s26 }
  0x1a   :  { %v33_v7 = vmul.f32 %v31_v5, %v29_v3 }
  0x1b   :  { %v34_v8 = vmul.f32 0.044715, %v32_v6  ;;  %p111_p11 = por %p110_p10, %p109_p9 }
  0x1c   :  { %v35_v9 = vmul.f32 0.044715, %v33_v7 }
  0x1d   :  { %v36_v10 = vadd.f32 %v34_v8, %v28_v2  ;;  %p112_p12 = pnand %p111_p11, %p105_p8 }
  0x1e   :  { %v37_v11 = vadd.f32 %v35_v9, %v29_v3 }
  0x1f   :  { %v38_v12 = vmul.f32 0.7978846, %v36_v10 }
  0x20   :  { %v39_v13 = vmul.f32 0.7978846, %v37_v11 }
  0x21   :  { %78 = vtanh.f32 %v38_v12 }
  0x22   :  { %80 = vtanh.f32 %v39_v13 }
  0x2b   :  { %v79_v14 = vpop.eup %78 }
  0x2c   :  { %v81_v15 = vpop.eup %80  ;;  %v42_v16 = vadd.f32 1.0, %v79_v14 }
  0x2d   :  { %v43_v17 = vadd.f32 1.0, %v81_v15 }
  0x2e   :  { %v44_v18 = vmul.f32 0.5, %v42_v16 }
  0x2f   :  { %v45_v19 = vmul.f32 0.5, %v43_v17 }
  0x30   :  { %v46_v20 = vmul.f32 %v44_v18, %v28_v2 }
  0x31   :  { %v47_v21 = vmul.f32 %v45_v19, %v29_v3 }
  0x48   :  { %s73_s25 = spop %72 }
  0x49   :  { %v50_v22 = vstv %s73_s25 }
  0x4a   :  { %v51_v23 = vmul.f32 %v50_v22, %v46_v20  ;;  %v52_v24 = vmul.f32 %v50_v22, %v47_v21 }
  0x4c   :  { %53 = vst [vmem:[#allocation6] sm:$0xff] %v51_v23  ;;  %54 = vst [vmem:[#allocation6 + $0x8] sm:$0xff] %v52_v24 }
  0x4d   :  { %115 = shalt.err (!%p112_p12)
}
  0x4e   :  { %s116_s29 = scalar_lea.hbm %s184_s2, 256 }
  0x4f   :  { %p117_p13 = scmp.ne.s32.totalorder %s184_s2, %s116_s29  ;;  %p120_p0 = scmp.lt.u32.totalorder %s116_s29, %s184_s2 }
  0x51   :  { %p122_p1 = pnand %p120_p0, %p117_p13 }
  0x53   :  { %125 = shalt.err (!%p122_p1)
}
  0x54   :  { %66 = dma.vmem_to_hbm [thread:$0]  %s61_s24, 256, %s184_s2, [#allocation5], %s131_s20, %s131_s20, %s132_s21  }
  0x55   :  { %128 = dma.done.wait [#allocation5], 256  }
  0x56   :  { %129 = vsyncadd [#allocation5], 4294967040 }
  0x57   :  { %70 = vsyncpa [#allocation4], 1 }
  0x58   :  { %71 = vsyncpa [#allocation5], 1 }

</bundles_post_ra>
